<compile_context>
chip_gen: v6e
topology: v6e:2x2x1
jax: 0.10.0
libtpu: 0.0.40
codegen_flags: <defaults>
</compile_context>

<pallas_src>
import math

import jax
import jax.numpy as jnp
from jax.experimental import pallas as pl
from jax.experimental.pallas import tpu as pltpu


def _round_up(n, m):
    return ((n + m - 1) // m) * m


def _make_state_kernel(in_features, threshold, decay):
    inv_in = 1.0 / float(in_features)
    thr = float(threshold)
    dec = float(decay)

    def state_kernel(xt_ref, x0_ref, v_ref, pre_ref,
                     v_out_ref, pre_out_ref, spk_ref, spk_scaled_ref):
        xt = xt_ref[...]       # (K, spk_pad)  -- x transposed, lane-aligned with v
        x0 = x0_ref[...]       # (1, K)        -- original row 0 of x
        v = v_ref[...]         # (1, spk_pad)
        pre = pre_ref[...]     # (1, K)

        # --- presynaptic spike-history update (elementwise, VPU) ---
        pre_out_ref[...] = jnp.where(
            x0 > 0.0,
            jnp.ones_like(pre),
            jnp.where(pre >= 1.0, pre + 1.0, pre),
        )

        # --- membrane potential update ---
        # Sublane-axis reduction: result is already a lane-dense (1, spk_pad) row.
        s = jnp.sum(xt, axis=0, keepdims=True)
        v_new = v * dec + s * 10.0

        # --- threshold / spike / reset ---
        # Zero-padded lanes never spike because threshold (=20) > 0.
        mask = v_new >= thr
        spk = mask.astype(jnp.float32)
        v_out_ref[...] = jnp.where(mask, 0.0, v_new)
        spk_ref[...] = spk
        # Fold the 1/in_features scale into the spike row once, so the big
        # tiled kernel does a single multiply per weight element.
        spk_scaled_ref[...] = spk * inv_in

    return state_kernel


def _scale_weight_kernel(spk_ref, w_ref, out_ref):
    # out[i, j] = weight[i, j] * (spikes[j] / in_features)
    # spk_ref holds the whole scaled spike row, reshaped to (grid_j, tn) and
    # resident in VMEM (constant index_map -> DMA'd once); pick this column
    # block's chunk by sublane index j and broadcast over the tm sublanes.
    j = pl.program_id(1)
    out_ref[...] = w_ref[...] * spk_ref[pl.ds(j, 1), :]


def lif_forward(x, v, pre, weight, *, tau=1.0, threshold=20.0,
                tile_m=512, tile_n=1024):
    """Functional LIF forward.  Returns (out, new_v, new_pre, spikes).

    x      : (in_features, K)    float32   (rows summed over K, as torch.sum(x, 1))
    v      : (1, in_features)    float32   membrane potential
    pre    : (1, K)              float32   presynaptic spike history
    weight : (out_features, in_features) float32
    """
    in_features, k = x.shape
    out_features = weight.shape[0]
    assert weight.shape == (out_features, in_features)
    assert v.shape == (1, in_features)
    assert pre.shape == (1, k)

    decay = math.exp(-0.01 / tau)

    # ---- tiling for the HBM-bound weight*spike kernel ----
    # Large, lane-dense tiles (>=512 wide when possible), capped at the
    # 8/128-rounded problem size so small layers don't waste VMEM.
    # (tm, tn) = (512, 1024) f32 is ~8 MiB double-buffered (w-in + out), which
    # fits the scoped-VMEM defaults on v5e (16 MiB), v6e (32 MiB), v7x (32 MiB).
    tm = min(tile_m, _round_up(out_features, 8))
    tn = min(tile_n, _round_up(in_features, 128))
    grid_i = pl.cdiv(out_features, tm)
    grid_j = pl.cdiv(in_features, tn)
    spk_pad = grid_j * tn            # spike-row lane width (multiple of tn)

    # Lane padding is applied only to the tiny state arrays (zeros in the
    # padded region never cross the threshold, so they never spike).
    x_t = jnp.pad(x.T, ((0, 0), (0, spk_pad - in_features)))     # (K, spk_pad)
    x0 = x[0:1, :]                                               # (1, K)
    v_p = jnp.pad(v, ((0, 0), (0, spk_pad - in_features)))       # (1, spk_pad)

    # ---- kernel 1: state update (tiny, whole-resident in VMEM) ----
    vmem = pl.BlockSpec(memory_space=pltpu.MemorySpace.VMEM)
    state_kernel = _make_state_kernel(in_features, threshold, decay)

    new_v_pad, new_pre, spikes_pad, spk_scaled = pl.pallas_call(
        state_kernel,
        out_shape=(
            jax.ShapeDtypeStruct((1, spk_pad), jnp.float32),   # new v
            jax.ShapeDtypeStruct((1, k), jnp.float32),         # new pre history
            jax.ShapeDtypeStruct((1, spk_pad), jnp.float32),   # spikes ('cur')
            jax.ShapeDtypeStruct((1, spk_pad), jnp.float32),   # spikes / in_features
        ),
        in_specs=[vmem, vmem, vmem, vmem],
        out_specs=(vmem, vmem, vmem, vmem),
    )(x_t, x0, v_p, pre)

    # Spike row chopped into grid_j chunks of tn lanes: row j is the scaled
    # spike chunk for column block j.  Tiny array; trivial reshape.
    spk_2d = spk_scaled.reshape(grid_j, tn)

    # ---- kernel 2: tiled, pipelined  out = weight * spk_scaled ----
    # Runs directly on the UNPADDED weight with a cdiv grid: partial edge
    # blocks are handled by Pallas (OOB reads are garbage in the discarded
    # region only; OOB writes are dropped), so there is no extra HBM pass for
    # pad or slice.  Both grid axes are independent -> megacore-parallel.
    out = pl.pallas_call(
        _scale_weight_kernel,
        out_shape=jax.ShapeDtypeStruct((out_features, in_features), weight.dtype),
        grid=(grid_i, grid_j),
        in_specs=[
            pl.BlockSpec((grid_j, tn), lambda i, j: (0, 0)),   # spike row: resident, 1 DMA
            pl.BlockSpec((tm, tn), lambda i, j: (i, j)),       # weight tile
        ],
        out_specs=pl.BlockSpec((tm, tn), lambda i, j: (i, j)),
        compiler_params=pltpu.CompilerParams(
            dimension_semantics=("parallel", "parallel"),
        ),
    )(spk_2d, weight)

    # Slices below touch only the tiny (1, spk_pad) state rows.
    new_v = new_v_pad[:, :in_features]
    spikes = spikes_pad[:, :in_features]
    return out, new_v, new_pre, spikes


def _lif_reference(x, v, pre, weight, tau, threshold):
    """Pure-JAX reference matching the PyTorch forward."""
    in_features = x.shape[0]
    decay = math.exp(-0.01 / tau)
    x0 = x[0:1, :]
    new_pre = jnp.where(x0 > 0.0, 1.0, jnp.where(pre >= 1.0, pre + 1.0, pre))
    v_new = v * decay + jnp.sum(x, axis=1)[None, :] * 10.0
    spk = (v_new >= threshold).astype(jnp.float32)
    v_out = jnp.where(spk > 0.0, 0.0, v_new)
    out = weight * spk / in_features
    return out, v_out, new_pre, spk


if __name__ == "__main__":
    tau = 1.0
    # (in_features, out_features, K):
    #   * small aligned case
    #   * non-128-multiple case (padding of the state row, partial edge block)
    #   * multi-block case (grid 2x2, partial edges on both axes, j>0 chunk)
    for in_features, out_features, k in [(32, 16, 8), (300, 40, 8), (1300, 600, 8)]:
        key = jax.random.PRNGKey(0)
        kx, kw = jax.random.split(key)

        # weight.data.uniform_(0, 1)
        weight = jax.random.uniform(kw, (out_features, in_features), dtype=jnp.float32)
        # input drive; some rows strong enough to cross the threshold of 20
        x = jax.random.uniform(kx, (in_features, k), dtype=jnp.float32) * 2.0 - 0.5
        # initial state: v = zeros(in_features), pre history = zeros(x.shape[1])
        v0 = jnp.zeros((1, in_features), dtype=jnp.float32)
        pre0 = jnp.zeros((1, k), dtype=jnp.float32)

        out, v1, pre1, spikes = lif_forward(x, v0, pre0, weight, tau=tau)
        jax.block_until_ready((out, v1, pre1, spikes))

        out_r, v_r, pre_r, spk_r = _lif_reference(x, v0, pre0, weight, tau, 20.0)
        assert jnp.allclose(out, out_r, atol=1e-6), "out mismatch"
        assert jnp.allclose(v1, v_r, atol=1e-4), "v mismatch"
        assert jnp.allclose(pre1, pre_r, atol=1e-6), "pre history mismatch"
        assert jnp.allclose(spikes, spk_r, atol=1e-6), "spikes mismatch"

    print("KERNEL_OK")
</pallas_src>

<mosaic_0001>
module attributes {stable_mosaic.version = 11 : i64} {
  func.func @state_kernel(%arg0: memref<8x128xf32, #tpu.memory_space<vmem>>, %arg1: memref<1x8xf32, #tpu.memory_space<vmem>>, %arg2: memref<1x128xf32, #tpu.memory_space<vmem>>, %arg3: memref<1x8xf32, #tpu.memory_space<vmem>>, %arg4: memref<1x128xf32, #tpu.memory_space<vmem>>, %arg5: memref<1x8xf32, #tpu.memory_space<vmem>>, %arg6: memref<1x128xf32, #tpu.memory_space<vmem>>, %arg7: memref<1x128xf32, #tpu.memory_space<vmem>>) attributes {dimension_semantics = [], scalar_prefetch = 0 : i64, scratch_operands = 0 : i64, tpu.core_type = #tpu.core_type<tc>} {
    %c0 = arith.constant 0 : index
    %c0_0 = arith.constant 0 : index
    %0 = vector.load %arg0[%c0, %c0_0] : memref<8x128xf32, #tpu.memory_space<vmem>>, vector<8x128xf32>
    %c0_1 = arith.constant 0 : index
    %c0_2 = arith.constant 0 : index
    %1 = vector.load %arg1[%c0_1, %c0_2] : memref<1x8xf32, #tpu.memory_space<vmem>>, vector<1x8xf32>
    %c0_3 = arith.constant 0 : index
    %c0_4 = arith.constant 0 : index
    %2 = vector.load %arg2[%c0_3, %c0_4] : memref<1x128xf32, #tpu.memory_space<vmem>>, vector<1x128xf32>
    %c0_5 = arith.constant 0 : index
    %c0_6 = arith.constant 0 : index
    %3 = vector.load %arg3[%c0_5, %c0_6] : memref<1x8xf32, #tpu.memory_space<vmem>>, vector<1x8xf32>
    %cst = arith.constant 0.000000e+00 : f32
    %4 = vector.broadcast %cst : f32 to vector<1x8xf32>
    %5 = arith.cmpf ogt, %1, %4 : vector<1x8xf32>
    %cst_7 = arith.constant 1.000000e+00 : f32
    %6 = vector.broadcast %cst_7 : f32 to vector<1x8xf32>
    %cst_8 = arith.constant 1.000000e+00 : f32
    %7 = vector.broadcast %cst_8 : f32 to vector<1x8xf32>
    %8 = arith.cmpf oge, %3, %7 : vector<1x8xf32>
    %cst_9 = arith.constant 1.000000e+00 : f32
    %9 = vector.broadcast %cst_9 : f32 to vector<1x8xf32>
    %10 = arith.addf %3, %9 : vector<1x8xf32>
    %11 = arith.select %8, %10, %3 : vector<1x8xi1>, vector<1x8xf32>
    %12 = arith.select %5, %6, %11 : vector<1x8xi1>, vector<1x8xf32>
    %c0_10 = arith.constant 0 : index
    %c0_11 = arith.constant 0 : index
    %13 = vector.load %arg5[%c0_10, %c0_11] : memref<1x8xf32, #tpu.memory_space<vmem>>, vector<1x8xf32>
    tpu.vector_store %arg5[%c0_10, %c0_11], %12 {strides = array<i32>} : memref<1x8xf32, #tpu.memory_space<vmem>>, vector<1x8xf32>,
    %cst_12 = arith.constant dense<0.000000e+00> : vector<128xf32>
    %14 = vector.multi_reduction <add>, %0, %cst_12 [0] : vector<8x128xf32> to vector<128xf32>
    %15 = vector.shape_cast %14 : vector<128xf32> to vector<1x128xf32>
    %cst_13 = arith.constant 0.990049839 : f32
    %16 = vector.broadcast %cst_13 : f32 to vector<1x128xf32>
    %17 = arith.mulf %2, %16 : vector<1x128xf32>
    %cst_14 = arith.constant 1.000000e+01 : f32
    %18 = vector.broadcast %cst_14 : f32 to vector<1x128xf32>
    %19 = arith.mulf %15, %18 : vector<1x128xf32>
    %20 = arith.addf %17, %19 : vector<1x128xf32>
    %cst_15 = arith.constant 2.000000e+01 : f32
    %21 = vector.broadcast %cst_15 : f32 to vector<1x128xf32>
    %22 = arith.cmpf oge, %20, %21 : vector<1x128xf32>
    %23 = arith.extui %22 : vector<1x128xi1> to vector<1x128xi32>
    %24 = arith.sitofp %23 : vector<1x128xi32> to vector<1x128xf32>
    %cst_16 = arith.constant 0.000000e+00 : f32
    %25 = vector.broadcast %cst_16 : f32 to vector<1x128xf32>
    %26 = arith.select %22, %25, %20 : vector<1x128xi1>, vector<1x128xf32>
    %c0_17 = arith.constant 0 : index
    %c0_18 = arith.constant 0 : index
    %27 = vector.load %arg4[%c0_17, %c0_18] : memref<1x128xf32, #tpu.memory_space<vmem>>, vector<1x128xf32>
    tpu.vector_store %arg4[%c0_17, %c0_18], %26 {strides = array<i32>} : memref<1x128xf32, #tpu.memory_space<vmem>>, vector<1x128xf32>,
    %c0_19 = arith.constant 0 : index
    %c0_20 = arith.constant 0 : index
    %28 = vector.load %arg6[%c0_19, %c0_20] : memref<1x128xf32, #tpu.memory_space<vmem>>, vector<1x128xf32>
    tpu.vector_store %arg6[%c0_19, %c0_20], %24 {strides = array<i32>} : memref<1x128xf32, #tpu.memory_space<vmem>>, vector<1x128xf32>,
    %cst_21 = arith.constant 3.125000e-02 : f32
    %29 = vector.broadcast %cst_21 : f32 to vector<1x128xf32>
    %30 = arith.mulf %24, %29 : vector<1x128xf32>
    %c0_22 = arith.constant 0 : index
    %c0_23 = arith.constant 0 : index
    %31 = vector.load %arg7[%c0_22, %c0_23] : memref<1x128xf32, #tpu.memory_space<vmem>>, vector<1x128xf32>
    tpu.vector_store %arg7[%c0_22, %c0_23], %30 {strides = array<i32>} : memref<1x128xf32, #tpu.memory_space<vmem>>, vector<1x128xf32>,
    return
  }
}

</mosaic_0001>

<bundles_post_ra>
// kernel: tpu_custom_call.1
= control target key start
LH: loop header
LB: loop body
LE: loop exit
PB: predicated region body
PF: predicated region fallthrough
CT: control target
= control target key end

     0   :  { %13 = vsyncpa [#allocation3], 0  ;;  %s305_s0 = inlined_call_operand.hbm [shape: f32[8,128], index: 0, kind: input, shape index: {}]   ;;  %s306_s1 = inlined_call_operand.vmem [shape: f32[1,8], index: 1, kind: input, shape index: {}]   ;;  %s307_s2 = inlined_call_operand.vmem [shape: f32[1,128], index: 2, kind: input, shape index: {}]   ;;  %s308_s3 = inlined_call_operand.vmem [shape: f32[1,8], index: 3, kind: input, shape index: {}]   ;;  %s309_s4 = inlined_call_operand.hbm [shape: f32[1,128], index: 4, kind: output, shape index: {0}]   ;;  %s310_s5 = inlined_call_operand.hbm [shape: f32[1,8], index: 5, kind: output, shape index: {1}]   ;;  %s311_s6 = inlined_call_operand.hbm [shape: f32[1,128], index: 6, kind: output, shape index: {2}]   ;;  %s312_s7 = inlined_call_operand.hbm [shape: f32[1,128], index: 7, kind: output, shape index: {3}]  }
   0x1   :  { %14 = vsyncpa [#allocation4], 0 }
   0x2   :  { %15 = vsyncpa [#allocation7], 0 }
   0x3   :  { %16 = vsyncpa [#allocation10], 0  ;;  %s235_s24 = smov [#allocation2]  }
   0x4   :  { %s23_s25 = sshll.u32 %s235_s24, 4  ;;  %s24_s25 = int_to_ptr.vmem [resolvable:$true] %s23_s25 }
   0x5   :  { %s135_s26 = scalar_lea.vmem %s24_s25, 128  ;;  %p140_p1 = scmp.lt.s32.totalorder %s24_s25, %s24_s25 }
   0x6   :  { %p136_p0 = scmp.ne.s32.totalorder %s24_s25, %s135_s26  ;;  %p141_p2 = scmp.lt.s32.totalorder %s135_s26, %s135_s26 }
   0x8   :  { %p142_p3 = por %p141_p2, %p140_p1 }
   0xa   :  { %p143_p4 = pnand %p142_p3, %p136_p0 }
   0xc   :  { %146 = shalt.err (!%p143_p4)
}
   0xd   :  { %26 = dma.hbm_to_vmem [thread:$0]  %s305_s0, 128, %s24_s25, [#allocation3]  }
   0xe   :  { %227 = dma.done.wait [#allocation3], 128  }
   0xf   :  { %228 = vsyncadd [#allocation3], 4294967168  ;;  %v37_v0 = vld [vmem:[%s306_s1] sm:$0x1]  ;;  %s236_s10 = smov [#allocation6]   ;;  %vm45_vm2 = vcmask 57344  }
  0x10   :  { %v39_v1 = vld [vmem:[%s308_s3] sm:$0x1]  ;;  %s80_s11 = sshll.u32 %s236_s10, 4  ;;  %vm40_vm0 = vcmp.gt.f32.partialorder %v37_v0, 0.0  ;;  %s81_s11 = int_to_ptr.vmem [resolvable:$true] %s80_s11 }
  0x11   :  { %v36_v2 = vld [vmem:[#allocation2] sm:$0xff]  ;;  %vm41_vm1 = vcmp.ge.f32.partialorder %v39_v1, 1.0  ;;  %v42_v3 = vadd.f32 1.0, %v39_v1  ;;  %s147_s0 = scalar_lea.vmem %s81_s11, 16  ;;  %s151_s1 = scalar_lea.vmem %s81_s11, 32 }
  0x12   :  { %v47_v4 = vrot.slane %v36_v2, 4  ;;  %p148_p5 = scmp.ne.s32.totalorder %s81_s11, %s147_s0  ;;  %p152_p6 = scmp.lt.s32.totalorder %s81_s11, %s81_s11 }
  0x13   :  { %v43_v5 = vsel %vm41_vm1, %v42_v3, %v39_v1  ;;  %p153_p7 = scmp.lt.s32.totalorder %s151_s1, %s147_s0 }
  0x14   :  { %v48_v6 = vadd.f32 %v47_v4, %v36_v2  ;;  %v44_v7 = vsel %vm40_vm0, 1.0, %v43_v5 }
  0x15   :  { %46 = vst.msk [vmem:[#allocation6] sm:$0x1] %vm45_vm2, %v44_v7  ;;  %p154_p8 = por %p153_p7, %p152_p6 }
  0x16   :  { %v49_v8 = vrot.slane %v48_v6, 2 }
  0x17   :  { %p155_p9 = pnand %p154_p8, %p148_p5 }
  0x19   :  { %158 = shalt.err (!%p155_p9)
}
  0x1a   :  { %83 = dma.vmem_to_hbm [thread:$0]  %s81_s11, 16, %s310_s5, [#allocation7]   ;;  %v50_v9 = vadd.f32 %v49_v8, %v48_v6  ;;  %v38_v10 = vld [vmem:[%s307_s2] sm:$0x1]  ;;  %v240_v17 = vmov 0.0  }
  0x1b   :  { %v53_v13 = vmul.f32 0.99004984, %v38_v10  ;;  %s237_s15 = smov [#allocation5]   ;;  %s238_s17 = smov [#allocation8]  }
  0x1c   :  { %v51_v11 = vrot.slane %v50_v9, 1  ;;  %s70_s16 = sshll.u32 %s237_s15, 4  ;;  %s90_s18 = sshll.u32 %s238_s17, 4  ;;  %s71_s16 = int_to_ptr.vmem [resolvable:$true] %s70_s16  ;;  %s91_s18 = int_to_ptr.vmem [resolvable:$true] %s90_s18 }
  0x1d   :  { %s239_s19 = smov [#allocation9]   ;;  %s167_s2 = scalar_lea.vmem %s71_s16, 16 }
  0x1e   :  { %v52_v12 = vadd.f32 %v51_v11, %v50_v9  ;;  %s100_s20 = sshll.u32 %s239_s19, 4  ;;  %p168_p10 = scmp.ne.s32.totalorder %s71_s16, %s167_s2  ;;  %s101_s20 = int_to_ptr.vmem [resolvable:$true] %s100_s20 }
  0x1f   :  { %s171_s5 = scalar_lea.vmem %s71_s16, 32  ;;  %p172_p11 = scmp.lt.s32.totalorder %s71_s16, %s71_s16 }
  0x20   :  { %v54_v14 = vmul.f32 10.0, %v52_v12  ;;  %p173_p12 = scmp.lt.s32.totalorder %s171_s5, %s167_s2 }
  0x22   :  { %v55_v15 = vadd.f32 %v54_v14, %v53_v13  ;;  %p174_p13 = por %p173_p12, %p172_p11 }
  0x24   :  { %vm56_vm3 = vcmp.ge.f32.partialorder %v55_v15, 20.0  ;;  %p175_p0 = pnand %p174_p13, %p168_p10 }
  0x25   :  { %v59_v16 = vsel %vm56_vm3, 0.0, %v55_v15  ;;  %v120_v18 = vsel %vm56_vm3, 1.0, %v240_v17 }
  0x26   :  { %60 = vst [vmem:[#allocation5] sm:$0x1] %v59_v16  ;;  %61 = vst [vmem:[#allocation8] sm:$0x1] %v120_v18  ;;  %v62_v19 = vmul.f32 0.03125, %v120_v18 }
  0x27   :  { %178 = shalt.err (!%p175_p0)
}
  0x28   :  { %73 = dma.vmem_to_hbm [thread:$0]  %s71_s16, 16, %s309_s4, [#allocation4]   ;;  %63 = vst [vmem:[#allocation9] sm:$0x1] %v62_v19 }
  0x29   :  { %s187_s23 = scalar_lea.vmem %s91_s18, 16  ;;  %s191_s24 = scalar_lea.vmem %s91_s18, 32 }
  0x2a   :  { %p188_p1 = scmp.ne.s32.totalorder %s91_s18, %s187_s23  ;;  %p192_p2 = scmp.lt.s32.totalorder %s91_s18, %s91_s18 }
  0x2b   :  { %p193_p3 = scmp.lt.s32.totalorder %s191_s24, %s187_s23 }
  0x2d   :  { %p194_p4 = por %p193_p3, %p192_p2 }
  0x2f   :  { %p195_p5 = pnand %p194_p4, %p188_p1 }
  0x31   :  { %198 = shalt.err (!%p195_p5)
}
  0x32   :  { %93 = dma.vmem_to_hbm [thread:$0]  %s91_s18, 16, %s311_s6, [#allocation7]  }
  0x33   :  { %s207_s27 = scalar_lea.vmem %s101_s20, 16  ;;  %s211_s28 = scalar_lea.vmem %s101_s20, 32 }
  0x34   :  { %p208_p6 = scmp.ne.s32.totalorder %s101_s20, %s207_s27  ;;  %p212_p7 = scmp.lt.s32.totalorder %s101_s20, %s101_s20 }
  0x35   :  { %p213_p8 = scmp.lt.s32.totalorder %s211_s28, %s207_s27 }
  0x37   :  { %p214_p9 = por %p213_p8, %p212_p7 }
  0x39   :  { %p215_p10 = pnand %p214_p9, %p208_p6 }
  0x3b   :  { %218 = shalt.err (!%p215_p10)
}
  0x3c   :  { %103 = dma.vmem_to_hbm [thread:$0]  %s101_s20, 16, %s312_s7, [#allocation10]  }
  0x3d   :  { %229 = dma.done.wait [#allocation4], 16  }
  0x3e   :  { %230 = vsyncadd [#allocation4], 4294967280 }
  0x3f   :  { %231 = dma.done.wait [#allocation7], 32  }
  0x40   :  { %232 = vsyncadd [#allocation7], 4294967264 }
  0x41   :  { %233 = dma.done.wait [#allocation10], 16  }
  0x42   :  { %234 = vsyncadd [#allocation10], 4294967280 }
  0x43   :  { %116 = vsyncpa [#allocation3], 1 }
  0x44   :  { %117 = vsyncpa [#allocation4], 1 }
  0x45   :  { %118 = vsyncpa [#allocation7], 1 }
  0x46   :  { %119 = vsyncpa [#allocation10], 1 }

</bundles_post_ra>
